<compile_context>
chip_gen: v7x
topology: tpu7x:2x2x1
jax: 0.10.0
libtpu: 0.0.40
codegen_flags: <defaults>
</compile_context>

<pallas_src>
import jax
import jax.numpy as jnp
from jax.experimental import pallas as pl
from jax.experimental.pallas import tpu as pltpu

LANE = 128


def _multi_head_kernel(x_ref, w1_ref, b1_ref, w2_ref, b2_ref, o_ref):
    """Fused Linear -> ReLU -> Linear for one head (one grid step).

    MXU operands are cast to bf16 (f32 accumulation); bias add / ReLU / store
    are f32.  All operands fit in VMEM at these sizes, so each grid step is a
    single full-block compute.
    """
    x = x_ref[...].astype(jnp.bfloat16)
    w1 = w1_ref[...].astype(jnp.bfloat16)
    # hidden = relu(x @ W1 + b1)
    h = jnp.dot(x, w1, preferred_element_type=jnp.float32) + b1_ref[...]
    h = jnp.maximum(h, 0.0)
    # logits = hidden @ W2 + b2   (W2/b2 are zero-padded to a lane-dense width)
    w2 = w2_ref[...].astype(jnp.bfloat16)
    out = jnp.dot(h.astype(jnp.bfloat16), w2,
                  preferred_element_type=jnp.float32) + b2_ref[...]
    o_ref[...] = out.astype(o_ref.dtype)


def multi_head_forward(x, w1s, b1s, w2s, b2s):
    """Run ALL heads in one pallas_call with grid=(num_models,).

    Returns a [num_models, batch, padded_classes] slab (lane-dense output).
    """
    num_models, in_features, hidden = w1s.shape
    padded_classes = w2s.shape[2]
    batch = x.shape[0]

    return pl.pallas_call(
        _multi_head_kernel,
        out_shape=jax.ShapeDtypeStruct((num_models, batch, padded_classes),
                                       jnp.float32),
        grid=(num_models,),
        in_specs=[
            # x is re-used for every model (no re-DMA per head needed).
            pl.BlockSpec((batch, in_features), lambda m: (0, 0)),
            # Per-model params: model dim squeezed out of the kernel view.
            pl.BlockSpec((None, in_features, hidden), lambda m: (m, 0, 0)),
            pl.BlockSpec((None, 1, hidden), lambda m: (m, 0, 0)),
            pl.BlockSpec((None, hidden, padded_classes), lambda m: (m, 0, 0)),
            pl.BlockSpec((None, 1, padded_classes), lambda m: (m, 0, 0)),
        ],
        out_specs=pl.BlockSpec((None, batch, padded_classes),
                               lambda m: (m, 0, 0)),
        compiler_params=pltpu.CompilerParams(
            # Model axis is independent -> shard across TCs on v7x.
            dimension_semantics=("parallel",),
        ),
    )(x, w1s, b1s, w2s, b2s)


class MultipleModels:
    """JAX/Pallas equivalent of pytorch_adapt's MultipleModels.

    Wraps N MLP-head parameter sets; __call__(x) returns a list with each
    head's output, matching `[m(x) for m in self.models]`.
    """

    def __init__(self, *model_params):
        assert len(model_params) >= 1
        self.num_models = len(model_params)
        self.num_classes = model_params[0][2].shape[1]

        # Pad the class dim up to a multiple of 128 so the output store is
        # lane-dense (unmasked vst); padding columns are zeros and are sliced
        # off in __call__.
        padded_classes = max(LANE, ((self.num_classes + LANE - 1) // LANE) * LANE)
        pad = padded_classes - self.num_classes

        self.w1s = jnp.stack([p[0] for p in model_params])            # [N,in,hid]
        self.b1s = jnp.stack([p[1] for p in model_params])            # [N,1,hid]
        self.w2s = jnp.stack(
            [jnp.pad(p[2], ((0, 0), (0, pad))) for p in model_params])  # [N,hid,Cpad]
        self.b2s = jnp.stack(
            [jnp.pad(p[3], ((0, 0), (0, pad))) for p in model_params])  # [N,1,Cpad]

        num_models = self.num_models
        num_classes = self.num_classes

        @jax.jit
        def _fwd(x, w1s, b1s, w2s, b2s):
            out = multi_head_forward(x, w1s, b1s, w2s, b2s)  # [N,B,Cpad]
            return tuple(out[i, :, :num_classes] for i in range(num_models))

        self._fwd = _fwd

    def __call__(self, x):
        return list(self._fwd(x, self.w1s, self.b1s, self.w2s, self.b2s))


def init_mlp_params(key, in_features, hidden, num_classes):
    """Deterministic (key-driven) parameter init for one MLP head."""
    k1, k2 = jax.random.split(key)
    scale1 = 1.0 / jnp.sqrt(jnp.float32(in_features))
    scale2 = 1.0 / jnp.sqrt(jnp.float32(hidden))
    w1 = jax.random.normal(k1, (in_features, hidden), jnp.float32) * scale1
    b1 = jnp.zeros((1, hidden), jnp.float32)
    w2 = jax.random.normal(k2, (hidden, num_classes), jnp.float32) * scale2
    b2 = jnp.zeros((1, num_classes), jnp.float32)
    return (w1, b1, w2, b2)


def reference_forward_f32(x, params):
    """Pure-JAX f32 reference."""
    w1, b1, w2, b2 = params
    h = jnp.maximum(x @ w1 + b1, 0.0)
    return h @ w2 + b2


def reference_forward_bf16(x, params):
    """Pure-JAX reference matching the kernel's MXU precision
    (bf16 operands, f32 accumulation, f32 bias/ReLU)."""
    w1, b1, w2, b2 = params
    bf = jnp.bfloat16
    h = jnp.dot(x.astype(bf), w1.astype(bf),
                preferred_element_type=jnp.float32) + b1
    h = jnp.maximum(h, 0.0)
    return jnp.dot(h.astype(bf), w2.astype(bf),
                   preferred_element_type=jnp.float32) + b2


if __name__ == "__main__":
    key = jax.random.PRNGKey(0)
    k_x, k_m1, k_m2 = jax.random.split(key, 3)

    batch, in_features, hidden, num_classes = 8, 32, 64, 16
    x = jax.random.normal(k_x, (batch, in_features), jnp.float32)

    # Two wrapped sub-models with independent (deterministic) weights.
    params_a = init_mlp_params(k_m1, in_features, hidden, num_classes)
    params_b = init_mlp_params(k_m2, in_features, hidden, num_classes)

    wrapped = MultipleModels(params_a, params_b)
    outputs = wrapped(x)
    outputs = [jax.block_until_ready(o) for o in outputs]

    for out, params in zip(outputs, (params_a, params_b)):
        assert out.shape == (batch, num_classes)
        # Tight check against the precision-matched (bf16-MXU) reference.
        ref_bf16 = reference_forward_bf16(x, params)
        assert jnp.allclose(out, ref_bf16, atol=2e-3, rtol=2e-3)
        # Loose sanity check against the full-f32 reference.
        ref_f32 = reference_forward_f32(x, params)
        assert jnp.allclose(out, ref_f32, atol=1e-1, rtol=1e-1)

    print("KERNEL_OK")
</pallas_src>

<mosaic_0001>
module attributes {stable_mosaic.version = 11 : i64} {
  func.func @_multi_head_kernel(%arg0: i32, %arg1: memref<8x32xf32, #tpu.memory_space<vmem>>, %arg2: memref<1x32x64xf32, #tpu.memory_space<vmem>>, %arg3: memref<1x1x64xf32, #tpu.memory_space<vmem>>, %arg4: memref<1x64x128xf32, #tpu.memory_space<vmem>>, %arg5: memref<1x1x128xf32, #tpu.memory_space<vmem>>, %arg6: memref<1x8x128xf32, #tpu.memory_space<vmem>>) attributes {dimension_semantics = [#tpu.dimension_semantics<parallel>], iteration_bounds = array<i64: 2>, scalar_prefetch = 0 : i64, scratch_operands = 0 : i64, tpu.core_type = #tpu.core_type<tc>, window_params = [{pipeline_mode = #tpu.pipeline_mode<synchronous>, transform_indices = @transform_0, window_bounds = array<i64: 8, 32>}, {transform_indices = @transform_1, window_bounds = array<i64: 1, 32, 64>}, {transform_indices = @transform_2, window_bounds = array<i64: 1, 1, 64>}, {transform_indices = @transform_3, window_bounds = array<i64: 1, 64, 128>}, {transform_indices = @transform_4, window_bounds = array<i64: 1, 1, 128>}, {transform_indices = @transform_5, window_bounds = array<i64: 1, 8, 128>}]} {
    %c0 = arith.constant 0 : index
    %c0_0 = arith.constant 0 : index
    %0 = vector.load %arg1[%c0, %c0_0] : memref<8x32xf32, #tpu.memory_space<vmem>>, vector<8x32xf32>
    %1 = arith.truncf %0 : vector<8x32xf32> to vector<8x32xbf16>
    %c0_1 = arith.constant 0 : index
    %c0_2 = arith.constant 0 : index
    %c0_3 = arith.constant 0 : index
    %2 = vector.load %arg2[%c0_1, %c0_2, %c0_3] : memref<1x32x64xf32, #tpu.memory_space<vmem>>, vector<1x32x64xf32>
    %3 = vector.shape_cast %2 : vector<1x32x64xf32> to vector<32x64xf32>
    %4 = arith.truncf %3 : vector<32x64xf32> to vector<32x64xbf16>
    %cst = arith.constant dense<0.000000e+00> : vector<8x64xf32>
    %5 = tpu.matmul %1, %4, %cst {dimension_numbers = #tpu.dot_dimension_numbers<[1], [0], [0], [1], [0, 0, 1, 1], [], []>} : vector<8x32xbf16>, vector<32x64xbf16>, vector<8x64xf32> -> vector<8x64xf32>
    %c0_4 = arith.constant 0 : index
    %c0_5 = arith.constant 0 : index
    %c0_6 = arith.constant 0 : index
    %6 = vector.load %arg3[%c0_4, %c0_5, %c0_6] : memref<1x1x64xf32, #tpu.memory_space<vmem>>, vector<1x1x64xf32>
    %7 = vector.shape_cast %6 : vector<1x1x64xf32> to vector<1x64xf32>
    %8 = vector.broadcast %7 : vector<1x64xf32> to vector<8x64xf32>
    %9 = arith.addf %5, %8 : vector<8x64xf32>
    %cst_7 = arith.constant 0.000000e+00 : f32
    %10 = vector.broadcast %cst_7 : f32 to vector<8x64xf32>
    %11 = arith.maximumf %9, %10 : vector<8x64xf32>
    %c0_8 = arith.constant 0 : index
    %c0_9 = arith.constant 0 : index
    %c0_10 = arith.constant 0 : index
    %12 = vector.load %arg4[%c0_8, %c0_9, %c0_10] : memref<1x64x128xf32, #tpu.memory_space<vmem>>, vector<1x64x128xf32>
    %13 = vector.shape_cast %12 : vector<1x64x128xf32> to vector<64x128xf32>
    %14 = arith.truncf %13 : vector<64x128xf32> to vector<64x128xbf16>
    %15 = arith.truncf %11 : vector<8x64xf32> to vector<8x64xbf16>
    %cst_11 = arith.constant dense<0.000000e+00> : vector<8x128xf32>
    %16 = tpu.matmul %15, %14, %cst_11 {dimension_numbers = #tpu.dot_dimension_numbers<[1], [0], [0], [1], [0, 0, 1, 1], [], []>} : vector<8x64xbf16>, vector<64x128xbf16>, vector<8x128xf32> -> vector<8x128xf32>
    %c0_12 = arith.constant 0 : index
    %c0_13 = arith.constant 0 : index
    %c0_14 = arith.constant 0 : index
    %17 = vector.load %arg5[%c0_12, %c0_13, %c0_14] : memref<1x1x128xf32, #tpu.memory_space<vmem>>, vector<1x1x128xf32>
    %18 = vector.shape_cast %17 : vector<1x1x128xf32> to vector<1x128xf32>
    %19 = vector.broadcast %18 : vector<1x128xf32> to vector<8x128xf32>
    %20 = arith.addf %16, %19 : vector<8x128xf32>
    %c0_15 = arith.constant 0 : index
    %c0_16 = arith.constant 0 : index
    %c0_17 = arith.constant 0 : index
    %21 = vector.load %arg6[%c0_15, %c0_16, %c0_17] : memref<1x8x128xf32, #tpu.memory_space<vmem>>, vector<1x8x128xf32>
    %22 = vector.shape_cast %21 : vector<1x8x128xf32> to vector<8x128xf32>
    %23 = vector.shape_cast %20 : vector<8x128xf32> to vector<1x8x128xf32>
    tpu.vector_store %arg6[%c0_15, %c0_16, %c0_17], %23 {strides = array<i32>} : memref<1x8x128xf32, #tpu.memory_space<vmem>>, vector<1x8x128xf32>,
    return
  }
  func.func @transform_0(%arg0: i32) -> (i32, i32) {
    %c0_i32 = arith.constant 0 : i32
    %c0_i32_0 = arith.constant 0 : i32
    %c0_i32_1 = arith.constant 0 : i32
    return %c0_i32, %c0_i32_0 : i32, i32
  }
  func.func @transform_1(%arg0: i32) -> (i32, i32, i32) {
    %c0_i32 = arith.constant 0 : i32
    %c0_i32_0 = arith.constant 0 : i32
    %c0_i32_1 = arith.constant 0 : i32
    return %arg0, %c0_i32, %c0_i32_0 : i32, i32, i32
  }
  func.func @transform_2(%arg0: i32) -> (i32, i32, i32) {
    %c0_i32 = arith.constant 0 : i32
    %c0_i32_0 = arith.constant 0 : i32
    %c0_i32_1 = arith.constant 0 : i32
    return %arg0, %c0_i32, %c0_i32_0 : i32, i32, i32
  }
  func.func @transform_3(%arg0: i32) -> (i32, i32, i32) {
    %c0_i32 = arith.constant 0 : i32
    %c0_i32_0 = arith.constant 0 : i32
    %c0_i32_1 = arith.constant 0 : i32
    return %arg0, %c0_i32, %c0_i32_0 : i32, i32, i32
  }
  func.func @transform_4(%arg0: i32) -> (i32, i32, i32) {
    %c0_i32 = arith.constant 0 : i32
    %c0_i32_0 = arith.constant 0 : i32
    %c0_i32_1 = arith.constant 0 : i32
    return %arg0, %c0_i32, %c0_i32_0 : i32, i32, i32
  }
  func.func @transform_5(%arg0: i32) -> (i32, i32, i32) {
    %c0_i32 = arith.constant 0 : i32
    %c0_i32_0 = arith.constant 0 : i32
    %c0_i32_1 = arith.constant 0 : i32
    return %arg0, %c0_i32, %c0_i32_0 : i32, i32, i32
  }
}

</mosaic_0001>

<bundles_post_ra>
// kernel: _fwd.1
= control target key start
LH: loop header
LB: loop body
LE: loop exit
PB: predicated region body
PF: predicated region fallthrough
CT: control target
= control target key end

     0   :  { %10 = vsyncpa [#allocation3], 0  ;;  %s1039_s0 = inlined_call_operand.hbm [shape: f32[8,32], index: 0, kind: input, shape index: {}]   ;;  %s1040_s1 = inlined_call_operand.hbm [shape: f32[2,32,64], index: 1, kind: input, shape index: {}]   ;;  %s1041_s2 = inlined_call_operand.vmem [shape: f32[2,1,64], index: 2, kind: input, shape index: {}]   ;;  %s1042_s3 = inlined_call_operand.hbm [shape: f32[2,64,128], index: 3, kind: input, shape index: {}]   ;;  %s1043_s4 = inlined_call_operand.vmem [shape: f32[2,1,128], index: 4, kind: input, shape index: {}]   ;;  %s1044_s5 = inlined_call_operand.vmem [shape: f32[2,8,128], index: 5, kind: output, shape index: {}]  }
   0x1   :  { %11 = vsyncpa [#allocation5], 0 }
   0x2   :  { %13 = vsyncpa [#allocation5 + $0x1], 0  ;;  %s837_s18 = smov 0   ;;  %s839_s19 = smov 0  }
   0x3   :  { %s841_s20 = smov 0   ;;  %s843_s21 = smov 0  }
   0x4 LB: > { %s858_s22 = sadd.s32 1, %s798_s21   ;;  %s47_s23 = sadd.s32 1, %s794_s20  ;;  %s798_s21 = sphi %s843_s21, %s1059_s21   ;;  %s794_s20 = sphi %s841_s20, %s1058_s20   ;;  %s790_s19 = sphi %s839_s19, %s1057_s19   ;;  %s786_s18 = sphi %s837_s18, %s1056_s18  }
   0x5   : > { %s44_s24 = ssub.s32 %s798_s21, %s858_s22  ;;  %p54_p0 = scmp.ne.s32.totalorder %s794_s20, %s790_s19 }
   0x6   : > { %p45_p1 = scmp.eq.s32.totalorder %s44_s24, 0  ;;  %p55_p2 = scmp.eq.s32.totalorder %s798_s21, 0 }
   0x7   : > { %p633_p3 = scmp.lt.s32.totalorder %s798_s21, 2  ;;  %s199_s26 = sand.u32 1, %s798_s21  }
   0x8   : > { %s868_s25 = scalar_select %p45_p1, %s794_s20, %s47_s23  }
   0x9   : > { %p56_p4 = por %p55_p2, %p54_p0  ;;  %s201_s27 = sand.u32 1, %s794_s20  }
   0xa   : > { %s566_s28 = sshll.u32 %s201_s27, 5  ;;  %s583_s29 = sshll.u32 %s798_s21, 9 }
   0xb   : > { %s878_s7 = scalar_lea.hbm %s1040_s1, %s583_s29  ;;  %s203_s8 = scalar_lea.vmem [#allocation4], %s566_s28 }
   0xc   : > { %s210_s9 = sshll.u32 %s203_s8, 4  ;;  %p880_p5 = pnand %p633_p3, %p56_p4  ;;  %s884_s9 = int_to_ptr.vmem [resolvable:$true] %s210_s9 }
   0xd   : > { %s886_s11 = scalar_lea.sflag [#allocation5], %s199_s26  ;;  %s672_s12 = scalar_lea.hbm %s878_s7, 512 }
   0xe   : > { %p673_p6 = scmp.ne.s32.totalorder %s878_s7, %s672_s12  ;;  %p674_p7 = pneg %p880_p5 }
   0xf   : > { %s677_s15 = scalar_lea.hbm %s1040_s1, 1024  ;;  %p678_p10 = scmp.lt.u32.totalorder %s878_s7, %s1040_s1 }
  0x10   : > { %p675_p8 = pnand %p674_p7, %p673_p6  ;;  %p679_p11 = scmp.lt.u32.totalorder %s677_s15, %s672_s12 }
  0x11   : > { %p681_p13 = scmp.lt.u32.totalorder %s672_s12, %s878_s7 }
  0x12   : > { %p676_p9 = pneg %p675_p8  ;;  %p680_p12 = por %p679_p11, %p678_p10 }
  0x14   : > { %p682_p0 = por %p681_p13, %p680_p12 }
  0x16   : > { %p683_p1 = pnand %p682_p0, %p676_p9 }
  0x18   : > { %686 = shalt.err (!%p683_p1)
}
  0x19   : > { %s687_s23 = scalar_lea.vmem %s884_s9, 512  ;;  %s800_s24 = smov [#allocation4]  }
  0x1a   : > { %p688_p2 = scmp.ne.s32.totalorder %s884_s9, %s687_s23  ;;  %s692_s26 = sshll.u32 %s800_s24, 4  ;;  %s693_s26 = int_to_ptr.vmem [resolvable:$false] %s692_s26 }
  0x1b   : > { %s694_s28 = scalar_lea.vmem %s693_s26, 1024  ;;  %p695_p6 = scmp.lt.s32.totalorder %s884_s9, %s693_s26 }
  0x1c   : > { %p690_p3 = pnand %p688_p2, %p674_p7  ;;  %p696_p8 = scmp.lt.s32.totalorder %s694_s28, %s687_s23 }
  0x1e   : > { %p691_p4 = pneg %p690_p3  ;;  %p697_p10 = por %p696_p8, %p695_p6 }
  0x20   : > { %p698_p11 = pnand %p697_p10, %p691_p4 }
  0x22   : > { %701 = shalt.err (!%p698_p11)
}
  0x23   : > { %s801_s29 = smov 128   ;;  %s802_s30 = smov 8  }
  0x24   : > { %628 = dma.hbm_to_vmem [thread:$0]  (!%p880_p5), %s878_s7, 512, %s884_s9, %s886_s11, %s801_s29, %s801_s29, %s802_s30  }
  0x25   : > { %s569_s6 = sshll.u32 %s201_s27, 6  ;;  %s920_s13 = sadd.s32 4294967295, %s798_s21  }
  0x26   : > { %s230_s8 = scalar_lea.vmem [#allocation6], %s569_s6  ;;  %p60_p9 = scmp.ne.s32.totalorder %s790_s19, %s786_s18 }
  0x27   : > { %s237_s12 = sshll.u32 %s230_s8, 4  ;;  %p1045_p12 = scmp.eq.s32.totalorder %s920_s13, 0  ;;  %s945_s12 = int_to_ptr.vmem [resolvable:$true] %s237_s12 }
  0x28   : > { %p563_p13 = scmp.ge.s32.totalorder %s798_s21, 1  ;;  %p175_p0 = scmp.lt.s32.totalorder %s798_s21, 3 }
  0x29   : > { %p929_p1 = por %p1045_p12, %p60_p9  ;;  %s803_s27 = smov [#allocation2]  }
  0x2a   : > { %p933_p2 = pnand %p563_p13, %p175_p0  ;;  %s188_s9 = sshll.u32 %s803_s27, 4  ;;  %s947_s9 = int_to_ptr.vmem [resolvable:$true] %s188_s9 }
  0x2b   : > { %s1049_s14 = scalar_select %p929_p1, 1, 0 }
  0x2c   : > { %s1050_s7 = scalar_select %p933_p2, 1, 0 }
  0x2d   : > { %s584_s15 = sshll.u32 %s798_s21, 10  ;;  %p621_p3 = pneg %p933_p2 }
  0x2e   : > { %s943_s17 = scalar_lea.hbm %s1042_s3, %s584_s15  ;;  %s707_s28 = scalar_lea.hbm %s1042_s3, 2048 }
  0x2f   : > { %p951_p4 = pnand %p621_p3, %p1045_p12  ;;  %s702_s21 = scalar_lea.hbm %s943_s17, 1024 }
  0x30   : > { %p703_p6 = scmp.ne.s32.totalorder %s943_s17, %s702_s21  ;;  %p708_p11 = scmp.lt.u32.totalorder %s943_s17, %s1042_s3 }
  0x31   : > { %p709_p9 = scmp.lt.u32.totalorder %s707_s28, %s702_s21  ;;  %p711_p0 = scmp.lt.u32.totalorder %s702_s21, %s943_s17 }
  0x32   : > { %p705_p8 = pnand %p703_p6, %p674_p7 }
  0x33   : > { %p710_p13 = por %p709_p9, %p708_p11 }
  0x34   : > { %p706_p10 = pneg %p705_p8 }
  0x35   : > { %p712_p3 = por %p711_p0, %p710_p13 }
  0x37   : > { %p713_p12 = pnand %p712_p3, %p706_p10 }
  0x39   : > { %716 = shalt.err (!%p713_p12)
}
  0x3a   : > { %s717_s27 = scalar_lea.vmem %s945_s12, 1024  ;;  %s804_s15 = smov [#allocation6]  }
  0x3b   : > { %p718_p6 = scmp.ne.s32.totalorder %s945_s12, %s717_s27  ;;  %s722_s18 = sshll.u32 %s804_s15, 4  ;;  %s723_s18 = int_to_ptr.vmem [resolvable:$false] %s722_s18 }
  0x3c   : > { %s724_s16 = scalar_lea.vmem %s723_s18, 2048  ;;  %p725_p2 = scmp.lt.s32.totalorder %s945_s12, %s723_s18 }
  0x3d   : > { %p720_p8 = pnand %p718_p6, %p674_p7  ;;  %p726_p11 = scmp.lt.s32.totalorder %s724_s16, %s717_s27 }
  0x3f   : > { %p721_p1 = pneg %p720_p8  ;;  %p727_p9 = por %p726_p11, %p725_p2 }
  0x41   : > { %p728_p13 = pnand %p727_p9, %p721_p1 }
  0x43   : > { %731 = shalt.err (!%p728_p13)
}
  0x44   : > { %631 = dma.hbm_to_vmem [thread:$0]  (!%p880_p5), %s943_s17, 1024, %s945_s12, %s886_s11, %s801_s29, %s801_s29, %s802_s30  }
  0x45   : > { %s732_s26 = scalar_lea.hbm %s1039_s0, 128  ;;  %p734_p12 = pneg %p951_p4 }
  0x46   : > { %p733_p7 = scmp.ne.s32.totalorder %s1039_s0, %s732_s26  ;;  %p739_p10 = scmp.lt.u32.totalorder %s732_s26, %s1039_s0 }
  0x48   : > { %p735_p1 = pnand %p734_p12, %p733_p7 }
  0x4a   : > { %p736_p2 = pneg %p735_p1 }
  0x4c   : > { %p741_p0 = pnand %p739_p10, %p736_p2 }
  0x4e   : > { %744 = shalt.err (!%p741_p0)
}
  0x4f   : > { %s745_s11 = scalar_lea.vmem %s947_s9, 128  ;;  %p753_p8 = scmp.lt.s32.totalorder %s947_s9, %s947_s9 }
  0x50   : > { %p746_p5 = scmp.ne.s32.totalorder %s947_s9, %s745_s11  ;;  %p754_p11 = scmp.lt.s32.totalorder %s745_s11, %s745_s11 }
  0x52   : > { %p748_p3 = pnand %p746_p5, %p734_p12  ;;  %p755_p9 = por %p754_p11, %p753_p8 }
  0x54   : > { %p749_p6 = pneg %p748_p3 }
  0x56   : > { %p756_p13 = pnand %p755_p9, %p749_p6 }
  0x58   : > { %759 = shalt.err (!%p756_p13)
}
  0x59   : > { %624 = dma.hbm_to_vmem [thread:$0]  (!%p951_p4), %s1039_s0, 128, %s947_s9, [#allocation3]  }
  0x5a   : > { %p1052_p7 = scmp.ne.s32.totalorder %s1050_s7, 0 }
  0x5b   : > { %p1053_p1 = scmp.eq.s32.totalorder (!%p1052_p7), %s920_s13, 0 }
  0x5c   : > { %255 = sbr.rel (%p1052_p7) target bundleno = 548 (0x224), region = 40 }
  0x63   : > { %777 = dma.done.wait (%p1053_p1), [#allocation3], 128   ;;  %p1054_p12 = pmov %p1053_p1 }
  0x64   : > { %s261_s12 = sand.u32 1, %s920_s13   ;;  %s263_s17 = sand.u32 1, %s790_s19  }
  0x65   : > { %779 = vsyncadd (%p1054_p12), [#allocation3], 4294967168  ;;  %s574_s23 = sshll.u32 %s263_s17, 5  ;;  %s262_s27 = scalar_lea.sflag [#allocation5], %s261_s12 }
  0x66   : > { %s265_s15 = scalar_lea.vmem [#allocation4], %s574_s23  ;;  %p1055_p2 = scmp.ne.s32.totalorder %s1049_s14, 0 }
  0x68   : > { %781 = dma.done.wait (%p1055_p2), %s262_s27, 1536  }
  0x69   : > { %783 = vsyncadd (%p1055_p2), %s262_s27, 4294965760  ;;  %v805_v0 = vmov 0.0   ;;  %vm806_vm0 = vmmov 0   ;;  %s575_s7 = sshll.u32 %s263_s17, 6  ;;  %v324_v1 = vld [vmem:[%s265_s15] sm:$0xff]  ;;  %v325_v2 = vld [vmem:[%s265_s15 + $0x8] sm:$0xff] }
  0x6a   : > { %593 = vmatprep.subr.bf16.mxu0 %v805_v0  ;;  %597 = vmatprep.mubr.msk.bf16.mxu0 %vm806_vm0, %v805_v0  ;;  %v326_v3 = vld [vmem:[%s265_s15 + $0x10] sm:$0xff]  ;;  %v328_v4 = vpack.c.bf16 %v325_v2, %v324_v1  ;;  %v327_v5 = vld [vmem:[%s265_s15 + $0x18] sm:$0xff]  ;;  %s274_s9 = scalar_lea.vmem [#allocation6], %s575_s7  ;;  %vm337_vm1 = vcmask 261120   ;;  %p311_p4 = scmp.lt.s32.totalorder %s920_s13, 1  ;;  %vm402_vm2 = vcmask 523264  }
  0x6b   : > { %601 = vmatprep.subr.bf16.mxu1 %v805_v0  ;;  %609 = vmatprep.mubr.msk.bf16.mxu1 %vm806_vm0, %v805_v0  ;;  %v382_v6 = vld [vmem:[%s274_s9] sm:$0xff]  ;;  %v383_v7 = vld [vmem:[%s274_s9 + $0x8] sm:$0xff]  ;;  %v384_v8 = vld [vmem:[%s274_s9 + $0x10] sm:$0xff]  ;;  %v329_v10 = vpack.c.bf16 %v327_v5, %v326_v3 }
  0x6c   : > { %v385_v9 = vld [vmem:[%s274_s9 + $0x18] sm:$0xff]  ;;  %594 = vmatpush3.bf16.msra.mxu0 %v328_v4  ;;  %v390_v12 = vpack.c.bf16 %v383_v7, %v382_v6  ;;  %v386_v15 = vld [vmem:[%s274_s9 + $0x20] sm:$0xff]  ;;  %v387_v16 = vld [vmem:[%s274_s9 + $0x28] sm:$0xff]  ;;  %s1061_s13 = smov (!%p311_p4, %s920_s13), 1 }
  0x6d   : > { %v322_v11 = vld [vmem:[#allocation2] sm:$0xff]  ;;  %595 = vmatprep.subr.bf16.mxu0 %v805_v0  ;;  %v391_v13 = vpack.c.bf16 %v385_v9, %v384_v8  ;;  %v392_v17 = vpack.c.bf16 %v387_v16, %v386_v15  ;;  %v388_v18 = vld [vmem:[%s274_s9 + $0x30] sm:$0xff]  ;;  %s313_s16 = scalar_lea.vmem %s1041_s2, %s1061_s13  ;;  %s316_s26 = scalar_lea.vmem %s1043_s4, %s1061_s13 }
  0x6e   : > { %602 = vmatpush3.bf16.msra.mxu1 %v390_v12  ;;  %v323_v14 = vpack.c.bf16 %v322_v11, %v322_v11  ;;  %v389_v19 = vld [vmem:[%s274_s9 + $0x38] sm:$0xff]  ;;  %s576_s28 = sshll.u32 %s1061_s13, 3 }
  0x6f   : > { %603 = vmatprep.subr.bf16.mxu1 %v805_v0  ;;  %v393_v20 = vpack.c.bf16 %v389_v19, %v388_v18  ;;  %v577_v21 = vld [vmem:[%s313_s16] ss:$0 sm:$0xff]  ;;  %s320_s8 = scalar_lea.vmem %s1044_s5, %s576_s28 }
  0x70   : > { %596 = vmatpush3.bf16.msra.mxu0 %v329_v10  ;;  %v579_v29 = vld [vmem:[%s316_s26] ss:$0 sm:$0xff] }
  0x72   : > { %604 = vmatpush3.bf16.msra.mxu1 %v391_v13 }
  0x73   : > { %598 = vmatmul.mubr.msk.bf16.vlgmr.msra.gmra.mrb[0].mxu0 %vm337_vm1, %v323_v14  ;;  %605 = vmatprep.subr.bf16.mxu1 %v805_v0 }
  0x76   : > { %606 = vmatpush3.bf16.msra.mxu1 %v392_v17 }
  0x77   : > { %607 = vmatprep.subr.bf16.mxu1 %v805_v0 }
  0x7a   : > { %608 = vmatpush3.bf16.msra.mxu1 %v393_v20 }
 0x146   : > { %v375_v22 = vpop.f32.mrb[0].mxu0 }
 0x147   : > { %v376_v23 = vadd.f32 %v577_v21, %v375_v22  ;;  %v599_v24 = vpop.f32.mrb[1].mxu0 }
 0x148   : > { %v378_v25 = vpop.f32.mrb[2].mxu0 }
 0x149   : > { %v381_v26 = vmax.f32 %v376_v23, 0.0  ;;  %v600_v27 = vpop.f32.mrb[3].mxu0 }
 0x14b   : > { %v394_v28 = vpack.c.bf16 %v381_v26, %v381_v26 }
 0x14d   : > { %610 = vmatmul.mubr.msk.bf16.vlgmr.msra.gmra.mrb[0].mxu1 %vm402_vm2, %v394_v28 }
 0x220   : > { %v440_v30 = vpop.f32.mrb[0].mxu1 }
 0x221   : > { %v441_v31 = vadd.f32 %v579_v29, %v440_v30  ;;  %v611_v32 = vpop.f32.mrb[1].mxu1 }
 0x222   : > { %v443_v33 = vpop.f32.mrb[2].mxu1 }
 0x223   : > { %446 = vst [vmem:[%s320_s8] sm:$0xff] %v441_v31  ;;  %v612_v34 = vpop.f32.mrb[3].mxu1 }
 0x224 PF: > { %p16_p10 = scmp.ge.s32.totalorder %s858_s22, 4   ;;  %s1056_s18 = smov %s790_s19 }
 0x225   : > { %s1057_s19 = smov %s794_s20  ;;  %s1058_s20 = smov %s868_s25 }
 0x226   : > { %s1059_s21 = smov %s858_s22  ;;  %18 = sbr.rel (!%p16_p10) target bundleno = 4 (0x4), region = 102 }
 0x22d   :  { %466 = vsyncpa [#allocation3], 1 }
 0x22e   :  { %468 = vsyncpa [#allocation3 + $0x1], 1 }
 0x22f   :  { %469 = vsyncpa [#allocation5], 1 }
 0x230   :  { %471 = vsyncpa [#allocation5 + $0x1], 1 }

</bundles_post_ra>
